<compile_context>
chip_gen: v5e
topology: v5e:2x2
jax: 0.10.0
libtpu: 0.0.40
codegen_flags: <defaults>
</compile_context>

<pallas_src>
import functools

import jax
import jax.numpy as jnp
from jax import lax
from jax.experimental import pallas as pl
from jax.experimental.pallas import tpu as pltpu

_LANE = 128


def _round_up(x, m):
    return (x + m - 1) // m * m


def _cpad(c):
    return _round_up(c, _LANE)


def _compute_vmem_limit():
    # Generation-aware scoped-VMEM limit: ~3/4 of physical capacity, capped at
    # 96 MiB (v5e/v6e: 128 MiB physical -> 96 MiB; v7x: 64 MiB -> 48 MiB).
    # Falls back to a conservative 32 MiB if the query is unavailable.
    try:
        info = pltpu.get_tpu_info()
        cap = getattr(info, "vmem_capacity_bytes", None)
        if not cap:
            return 32 * 1024 * 1024
        return int(min(cap * 3 // 4, 96 * 1024 * 1024))
    except Exception:
        return 32 * 1024 * 1024


_VMEM_LIMIT = _compute_vmem_limit()


# ----------------------------------------------------------------------------
# Generic Pallas matmul: out = act(A @ B [+ bias])
#   - single full-K pass (all K's in this model are small), adaptive tiles,
#     optional bias / ReLU, configurable compute dtype.
# ----------------------------------------------------------------------------
def _make_mm_kernel(relu, has_bias):
    def kernel(*refs):
        if has_bias:
            a_ref, b_ref, bias_ref, o_ref = refs
        else:
            a_ref, b_ref, o_ref = refs
        out = jnp.dot(a_ref[...], b_ref[...], preferred_element_type=jnp.float32)
        if has_bias:
            out = out + bias_ref[...]
        if relu:
            out = jnp.maximum(out, 0.0)
        o_ref[...] = out.astype(o_ref.dtype)

    return kernel


@functools.partial(jax.jit,
                   static_argnames=("relu", "out_dtype", "compute_dtype"))
def pallas_matmul(a, b, bias=None, *, relu=False,
                  out_dtype=jnp.float32, compute_dtype=jnp.float32):
    """out = act(a @ b + bias).  a: (M, K), b: (K, N), bias: (1, N) or (N,)."""
    M, K = a.shape
    K2, N = b.shape
    assert K == K2
    has_bias = bias is not None

    Np = _round_up(N, 128)
    TN = 256 if Np % 256 == 0 else 128          # 256-wide lanes for v6e/v7x MXU
    if M > 256:
        TM, Mp = 256, _round_up(M, 256)
    else:
        TM = Mp = _round_up(max(M, 8), 8)
    Kp = _round_up(max(K, 8), 8)

    def prep(x, rpad, cpad):
        # Skip the pad/cast prologue when the operand is already aligned and in
        # the compute dtype (true for conv1x1 activations / pre-padded weights).
        if rpad or cpad:
            x = jnp.pad(x, ((0, rpad), (0, cpad)))
        if x.dtype != compute_dtype:
            x = x.astype(compute_dtype)
        return x

    a_p = prep(a, Mp - M, Kp - K)
    b_p = prep(b, Kp - K, Np - N)
    args = [a_p, b_p]
    if has_bias:
        bias_p = bias.reshape(1, N).astype(jnp.float32)
        if Np != N:
            bias_p = jnp.pad(bias_p, ((0, 0), (0, Np - N)))
        args.append(bias_p)

    in_specs = [pl.BlockSpec((TM, Kp), lambda i, j: (i, 0)),
                pl.BlockSpec((Kp, TN), lambda i, j: (0, j))]
    if has_bias:
        in_specs.append(pl.BlockSpec((1, TN), lambda i, j: (0, j)))

    out = pl.pallas_call(
        _make_mm_kernel(relu, has_bias),
        out_shape=jax.ShapeDtypeStruct((Mp, Np), out_dtype),
        grid_spec=pltpu.PrefetchScalarGridSpec(
            num_scalar_prefetch=0,
            grid=(Mp // TM, Np // TN),
            in_specs=in_specs,
            out_specs=pl.BlockSpec((TM, TN), lambda i, j: (i, j))),
        compiler_params=pltpu.CompilerParams(
            dimension_semantics=("parallel", "parallel"),
            vmem_limit_bytes=_VMEM_LIMIT),
    )(*args)
    if Mp != M or Np != N:
        out = out[:M, :N]
    return out


def matmul_any(a, b):
    """fp32 matmul dispatcher for the OST transform path."""
    M, K = a.shape
    N = b.shape[1]
    if min(M, N, K) >= 128:
        return pallas_matmul(a, b, relu=False,
                             out_dtype=jnp.float32, compute_dtype=jnp.float32)
    # Tiny / skinny products (e.g. level 3-5 whitening where HW = 4..64): a
    # Pallas launch plus 128-padding exceeds the work — let XLA handle them.
    return jnp.dot(a, b, preferred_element_type=jnp.float32)


# ----------------------------------------------------------------------------
# Fused 3x3 reflect-pad conv + bias (+ ReLU) Pallas kernel.
#   - one input stream: the whole (H, W, Cin) image per grid step (largest
#     feature map in this model ~300 KB) — no HBM pad copy, no 3x read amp.
#   - reflect padding done in VMEM; the 3 dx taps of each ky row are
#     concatenated along lanes so each dot sees M = H*W, K = 3*Cin.
#   - grid = (B, Cout tiles): 512-wide layers give 2 parallel blocks (v7x).
# ----------------------------------------------------------------------------
def _conv3x3_kernel(x_ref, w_ref, b_ref, o_ref, *, relu):
    H, W, Cin = x_ref.shape
    x = x_ref[...]                                              # (H, W, Cin) bf16
    # reflect pad columns then rows (pad width 1 each side).
    xc = jnp.concatenate([x[:, 1:2, :], x, x[:, W - 2:W - 1, :]], axis=1)
    xp = jnp.concatenate([xc[1:2], xc, xc[H - 2:H - 1]], axis=0)  # (H+2, W+2, Cin)

    acc = None
    for dy in range(3):
        rows = xp[dy:dy + H]                                    # (H, W+2, Cin)
        taps = jnp.concatenate(
            [rows[:, 0:W, :], rows[:, 1:W + 1, :], rows[:, 2:W + 2, :]],
            axis=-1)                                            # (H, W, 3*Cin)
        part = jnp.dot(taps.reshape(H * W, 3 * Cin), w_ref[dy],
                       preferred_element_type=jnp.float32)      # (H*W, TN)
        acc = part if acc is None else acc + part

    acc = acc + b_ref[...]                                      # fp32 epilogue
    if relu:
        acc = jnp.maximum(acc, 0.0)
    o_ref[...] = acc.reshape(H, W, -1).astype(o_ref.dtype)


@functools.partial(jax.jit, static_argnames=("relu",))
def conv3x3(x, w3, b2, *, relu=True):
    """x: (B, H, W, Cin_p); w3: (3, 3*Cin_p, Cout_p) bf16; b2: (1, Cout_p) f32."""
    x = x.astype(jnp.bfloat16)
    B, H, W, Cin = x.shape
    Cout = w3.shape[2]
    TN = 256 if Cout % 256 == 0 else 128
    grid = (B, Cout // TN)

    return pl.pallas_call(
        functools.partial(_conv3x3_kernel, relu=relu),
        out_shape=jax.ShapeDtypeStruct((B, H, W, Cout), jnp.bfloat16),
        grid_spec=pltpu.PrefetchScalarGridSpec(
            num_scalar_prefetch=0,
            grid=grid,
            in_specs=[
                pl.BlockSpec((None, H, W, Cin), lambda b, j: (b, 0, 0, 0)),
                pl.BlockSpec((3, 3 * Cin, TN), lambda b, j: (0, 0, j)),
                pl.BlockSpec((1, TN), lambda b, j: (0, j)),
            ],
            out_specs=pl.BlockSpec((None, H, W, TN),
                                   lambda b, j: (b, 0, 0, j)),
        ),
        compiler_params=pltpu.CompilerParams(
            dimension_semantics=("parallel", "parallel"),
            vmem_limit_bytes=_VMEM_LIMIT),
    )(x, w3, b2)


@functools.partial(jax.jit, static_argnames=("relu",))
def conv1x1(x, w, b2, *, relu=False):
    """x: (B, H, W, Cin_p); w: (Cin_p, Cout_p) bf16; b2: (1, Cout_p) f32."""
    B, H, W, Cin = x.shape
    Cout = w.shape[1]
    out = pallas_matmul(x.astype(jnp.bfloat16).reshape(B * H * W, Cin), w, b2,
                        relu=relu, out_dtype=jnp.bfloat16,
                        compute_dtype=jnp.bfloat16)
    return out.reshape(B, H, W, Cout)


def maxpool2x2(x):
    B, H, W, C = x.shape
    return x.reshape(B, H // 2, 2, W // 2, 2, C).max(axis=(2, 4))


def upsample2x(x):
    B, H, W, C = x.shape
    y = jnp.broadcast_to(x[:, :, None, :, None, :], (B, H, 2, W, 2, C))
    return y.reshape(B, 2 * H, 2 * W, C)


# ----------------------------------------------------------------------------
# Encoder (VGG19 up to relu5_1) and mirror decoders
# ----------------------------------------------------------------------------
ENC_CONVS = [
    ("conv0", 3, 3, 1),
    ("conv1_1", 3, 64, 3), ("conv1_2", 64, 64, 3),
    ("conv2_1", 64, 128, 3), ("conv2_2", 128, 128, 3),
    ("conv3_1", 128, 256, 3), ("conv3_2", 256, 256, 3),
    ("conv3_3", 256, 256, 3), ("conv3_4", 256, 256, 3),
    ("conv4_1", 256, 512, 3), ("conv4_2", 512, 512, 3),
    ("conv4_3", 512, 512, 3), ("conv4_4", 512, 512, 3),
    ("conv5_1", 512, 512, 3),
]

# relu{L}_1 true channel counts (before lane padding).
REAL_C = {1: 64, 2: 128, 3: 256, 4: 512, 5: 512}

# (cin, cout, relu, upsample_after)
DEC_CFG = {
    5: [(512, 512, True, True), (512, 512, True, False), (512, 512, True, False),
        (512, 512, True, False), (512, 256, True, True), (256, 256, True, False),
        (256, 256, True, False), (256, 256, True, False), (256, 128, True, True),
        (128, 128, True, False), (128, 64, True, True), (64, 64, True, False),
        (64, 3, False, False)],
    4: [(512, 256, True, True), (256, 256, True, False), (256, 256, True, False),
        (256, 256, True, False), (256, 128, True, True), (128, 128, True, False),
        (128, 64, True, True), (64, 64, True, False), (64, 3, False, False)],
    3: [(256, 128, True, True), (128, 128, True, False), (128, 64, True, True),
        (64, 64, True, False), (64, 3, False, False)],
    2: [(128, 64, True, True), (64, 64, True, False), (64, 3, False, False)],
    1: [(64, 3, False, False)],
}


def encoder_features(eparams, x, max_level):
    """Run the encoder up to relu{max_level}_1, collecting all relu{l}_1."""
    feats = {}
    out = conv1x1(x, *eparams["conv0"], relu=False)
    out = conv3x3(out, *eparams["conv1_1"], relu=True)
    feats[1] = out
    if max_level == 1:
        return feats
    out = conv3x3(out, *eparams["conv1_2"], relu=True)
    out = maxpool2x2(out)
    out = conv3x3(out, *eparams["conv2_1"], relu=True)
    feats[2] = out
    if max_level == 2:
        return feats
    out = conv3x3(out, *eparams["conv2_2"], relu=True)
    out = maxpool2x2(out)
    out = conv3x3(out, *eparams["conv3_1"], relu=True)
    feats[3] = out
    if max_level == 3:
        return feats
    for n in ("conv3_2", "conv3_3", "conv3_4"):
        out = conv3x3(out, *eparams[n], relu=True)
    out = maxpool2x2(out)
    out = conv3x3(out, *eparams["conv4_1"], relu=True)
    feats[4] = out
    if max_level == 4:
        return feats
    for n in ("conv4_2", "conv4_3", "conv4_4"):
        out = conv3x3(out, *eparams[n], relu=True)
    out = maxpool2x2(out)
    out = conv3x3(out, *eparams["conv5_1"], relu=True)
    feats[5] = out
    return feats


def decoder_forward(dparams, cfg, x):
    for i, (_cin, _cout, relu, up) in enumerate(cfg):
        w3, b2 = dparams[f"conv{i}"]
        x = conv3x3(x, w3, b2, relu=relu)
        if up:
            x = upsample2x(x)
    return x


# ----------------------------------------------------------------------------
# OST feature transform (closed-form Gaussian optimal-transport map), fp32.
# ----------------------------------------------------------------------------
_EPS = 1e-5


def _matpow_from_eigh(w, v, invert):
    # TODO(synk): eigendecomposition has no Pallas equivalent; uses XLA eigh,
    # with relative rank truncation (pseudo-inverse style) rather than the
    # reference's fixed eigenvalue clamp.
    rel = jnp.maximum(jnp.max(w), 0.0) * 1e-7
    keep = w > rel
    w_safe = jnp.where(keep, w, 1.0)
    d = jnp.where(keep, lax.rsqrt(w_safe) if invert else jnp.sqrt(w_safe), 0.0)
    return (v * d) @ v.T


def feature_transform(cf, sf, c_real, alpha=1.0):
    """cf, sf: (1, H, W, Cp) NHWC (lane padded); transform runs on c_real chans."""
    B, H, W, Cp = cf.shape
    xc = cf[..., :c_real].astype(jnp.float32).reshape(B * H * W, c_real)
    xs = sf[..., :c_real].astype(jnp.float32).reshape(-1, c_real)
    nc, ns = xc.shape[0], xs.shape[0]

    c_mean = jnp.mean(xc, axis=0, keepdims=True)
    s_mean = jnp.mean(xs, axis=0, keepdims=True)
    xc_c = xc - c_mean
    xs_c = xs - s_mean

    eye = jnp.eye(c_real, dtype=jnp.float32)
    # Gram matrices: contract over the sample axis without an HBM transpose.
    dimnums = (((0,), (0,)), ((), ()))
    c_cov = lax.dot_general(xc_c, xc_c, dimnums,
                            preferred_element_type=jnp.float32) / (nc - 1)
    s_cov = lax.dot_general(xs_c, xs_c, dimnums,
                            preferred_element_type=jnp.float32) / (ns - 1)
    c_cov = c_cov + _EPS * eye
    s_cov = s_cov + _EPS * eye

    # One eigh of c_cov serves both C^{1/2} and C^{-1/2} (2 eigh/level, not 3).
    wc, vc = jnp.linalg.eigh(c_cov)
    c_sqrt = _matpow_from_eigh(wc, vc, invert=False)
    c_isqrt = _matpow_from_eigh(wc, vc, invert=True)

    mid = matmul_any(matmul_any(c_sqrt, s_cov), c_sqrt)
    wm, vm = jnp.linalg.eigh(mid)
    mid_sqrt = _matpow_from_eigh(wm, vm, invert=False)
    T = matmul_any(matmul_any(c_isqrt, mid_sqrt), c_isqrt)

    # T is symmetric, so (cf - mu_c) @ T == (cf - mu_c) @ T^T — no transpose.
    target = matmul_any(xc_c, T) + s_mean
    out = alpha * target + (1.0 - alpha) * xc
    out = out.reshape(B, H, W, c_real)
    if c_real < Cp:
        out = jnp.pad(out, ((0, 0), (0, 0), (0, 0), (0, Cp - c_real)))
    return out


# ----------------------------------------------------------------------------
# Full multi-level model (single jit: the graph is launch/latency dominated)
# ----------------------------------------------------------------------------
@jax.jit
def multi_level_ae_ost(params, content_nchw, style_nchw, alpha=1.0):
    def to_nhwc_padded(x_nchw):
        x = jnp.transpose(x_nchw.astype(jnp.float32), (0, 2, 3, 1))
        c = x.shape[-1]
        cp = _cpad(c)
        if cp != c:
            x = jnp.pad(x, ((0, 0), (0, 0), (0, 0), (0, cp - c)))
        return x.astype(jnp.bfloat16)

    content = to_nhwc_padded(content_nchw)
    style = to_nhwc_padded(style_nchw)

    # Style encoded ONCE; relu{L}_1 intermediates reused for every level
    # (identical to re-encoding: the encoder up to relu{L}_1 is a prefix).
    style_feats = encoder_features(params["encoder"], style, 5)

    x = content
    for level in (5, 4, 3, 2, 1):
        cf = encoder_features(params["encoder"], x, level)[level]
        sf = style_feats[level]
        res = feature_transform(cf, sf, REAL_C[level], alpha)
        x = decoder_forward(params[f"decoder{level}"], DEC_CFG[level], res)

    out = x[..., :3].astype(jnp.float32)        # drop channel padding
    return jnp.transpose(out, (0, 3, 1, 2))     # back to NCHW


# ----------------------------------------------------------------------------
# Deterministic parameter construction (pre-padded, MXU-friendly layouts)
# ----------------------------------------------------------------------------
def build_params(key):
    counter = [0]

    def next_key():
        k = jax.random.fold_in(key, counter[0])
        counter[0] += 1
        return k

    def make_conv3x3(cin, cout):
        fan_in = cin * 9
        w = jax.random.normal(next_key(), (cout, cin, 3, 3),
                              jnp.float32) * jnp.sqrt(2.0 / fan_in)
        b = 0.01 * jax.random.normal(next_key(), (cout,), jnp.float32)
        cinp, coutp = _cpad(cin), _cpad(cout)
        # (cout, cin, ky, kx) -> (ky, kx, cin_p, cout_p) -> (3, 3*cin_p, cout_p)
        wt = jnp.transpose(w, (2, 3, 1, 0))
        wt = jnp.pad(wt, ((0, 0), (0, 0), (0, cinp - cin), (0, coutp - cout)))
        w3 = wt.reshape(3, 3 * cinp, coutp).astype(jnp.bfloat16)
        b2 = jnp.pad(b, (0, coutp - cout)).reshape(1, coutp).astype(jnp.float32)
        return w3, b2

    def make_conv1x1(cin, cout):
        w = jax.random.normal(next_key(), (cout, cin, 1, 1),
                              jnp.float32) * jnp.sqrt(2.0 / cin)
        b = 0.01 * jax.random.normal(next_key(), (cout,), jnp.float32)
        cinp, coutp = _cpad(cin), _cpad(cout)
        wm = jnp.transpose(w, (2, 3, 1, 0)).reshape(cin, cout)
        wm = jnp.pad(wm, ((0, cinp - cin),
                          (0, coutp - cout))).astype(jnp.bfloat16)
        b2 = jnp.pad(b, (0, coutp - cout)).reshape(1, coutp).astype(jnp.float32)
        return wm, b2

    enc = {}
    for name, cin, cout, k in ENC_CONVS:
        enc[name] = make_conv1x1(cin, cout) if k == 1 else make_conv3x3(cin, cout)
    params = {"encoder": enc}
    for lvl, cfg in DEC_CFG.items():
        params[f"decoder{lvl}"] = {
            f"conv{i}": make_conv3x3(ci, co)
            for i, (ci, co, _, _) in enumerate(cfg)
        }
    return params


if __name__ == "__main__":
    key = jax.random.PRNGKey(0)
    pkey, ckey, skey = jax.random.split(key, 3)
    params = build_params(pkey)

    # Small shapes consistent with the module: batch=1, RGB, 32x32 images
    # (level-5 feature is 512 x 2 x 2 after 4 maxpools).
    content = jax.random.uniform(ckey, (1, 3, 32, 32), jnp.float32)
    style = jax.random.uniform(skey, (1, 3, 32, 32), jnp.float32)

    out = multi_level_ae_ost(params, content, style, 1.0)
    out = jax.block_until_ready(out)
    assert out.shape == (1, 3, 32, 32) and out.dtype == jnp.float32
    print("KERNEL_OK")
</pallas_src>

<mosaic_0001>
module attributes {stable_mosaic.version = 11 : i64} {
  func.func @kernel(%arg0: i32, %arg1: i32, %arg2: memref<256x128xbf16, #tpu.memory_space<vmem>>, %arg3: memref<128x128xbf16, #tpu.memory_space<vmem>>, %arg4: memref<1x128xf32, #tpu.memory_space<vmem>>, %arg5: memref<256x128xbf16, #tpu.memory_space<vmem>>) attributes {dimension_semantics = [#tpu.dimension_semantics<parallel>, #tpu.dimension_semantics<parallel>], iteration_bounds = array<i64: 4, 1>, scalar_prefetch = 0 : i64, scratch_operands = 0 : i64, tpu.core_type = #tpu.core_type<tc>, window_params = [{transform_indices = @transform_0, window_bounds = array<i64: 256, 128>}, {transform_indices = @transform_1, window_bounds = array<i64: 128, 128>}, {transform_indices = @transform_2, window_bounds = array<i64: 1, 128>}, {transform_indices = @transform_3, window_bounds = array<i64: 256, 128>}]} {
    %c0 = arith.constant 0 : index
    %c0_0 = arith.constant 0 : index
    %0 = vector.load %arg2[%c0, %c0_0] : memref<256x128xbf16, #tpu.memory_space<vmem>>, vector<256x128xbf16>
    %c0_1 = arith.constant 0 : index
    %c0_2 = arith.constant 0 : index
    %1 = vector.load %arg3[%c0_1, %c0_2] : memref<128x128xbf16, #tpu.memory_space<vmem>>, vector<128x128xbf16>
    %cst = arith.constant dense<0.000000e+00> : vector<256x128xf32>
    %2 = tpu.matmul %0, %1, %cst {dimension_numbers = #tpu.dot_dimension_numbers<[1], [0], [0], [1], [0, 0, 1, 1], [], []>} : vector<256x128xbf16>, vector<128x128xbf16>, vector<256x128xf32> -> vector<256x128xf32>
    %c0_3 = arith.constant 0 : index
    %c0_4 = arith.constant 0 : index
    %3 = vector.load %arg4[%c0_3, %c0_4] : memref<1x128xf32, #tpu.memory_space<vmem>>, vector<1x128xf32>
    %4 = vector.broadcast %3 : vector<1x128xf32> to vector<256x128xf32>
    %5 = arith.addf %2, %4 : vector<256x128xf32>
    %6 = arith.truncf %5 : vector<256x128xf32> to vector<256x128xbf16>
    %c0_5 = arith.constant 0 : index
    %c0_6 = arith.constant 0 : index
    %7 = vector.load %arg5[%c0_5, %c0_6] : memref<256x128xbf16, #tpu.memory_space<vmem>>, vector<256x128xbf16>
    tpu.vector_store %arg5[%c0_5, %c0_6], %6 {strides = array<i32>} : memref<256x128xbf16, #tpu.memory_space<vmem>>, vector<256x128xbf16>,
    return
  }
  func.func @transform_0(%arg0: i32, %arg1: i32) -> (i32, i32) {
    %c0_i32 = arith.constant 0 : i32
    %c0_i32_0 = arith.constant 0 : i32
    return %arg0, %c0_i32 : i32, i32
  }
  func.func @transform_1(%arg0: i32, %arg1: i32) -> (i32, i32) {
    %c0_i32 = arith.constant 0 : i32
    %c0_i32_0 = arith.constant 0 : i32
    return %c0_i32, %arg1 : i32, i32
  }
  func.func @transform_2(%arg0: i32, %arg1: i32) -> (i32, i32) {
    %c0_i32 = arith.constant 0 : i32
    %c0_i32_0 = arith.constant 0 : i32
    return %c0_i32, %arg1 : i32, i32
  }
  func.func @transform_3(%arg0: i32, %arg1: i32) -> (i32, i32) {
    %c0_i32 = arith.constant 0 : i32
    return %arg0, %arg1 : i32, i32
  }
}

</mosaic_0001>

<bundles_post_ra>
// kernel: pallas_matmul.1
= control target key start
LH: loop header
LB: loop body
LE: loop exit
PB: predicated region body
PF: predicated region fallthrough
CT: control target
= control target key end

     0   :  { %s1459_s0 = inlined_call_operand.hbm [shape: bf16[1024,128], index: 0, kind: input, shape index: {}]   ;;  %s1460_s1 = inlined_call_operand.hbm [shape: bf16[128,128], index: 1, kind: input, shape index: {}]   ;;  %s1461_s2 = inlined_call_operand.vmem [shape: f32[1,128], index: 2, kind: input, shape index: {}]   ;;  %s1462_s3 = inlined_call_operand.hbm [shape: bf16[1024,128], index: 3, kind: output, shape index: {}]  }
   0x1   :  { %1464 = sst [smem:[#allocation11_spill]] %s1460_s1 }
   0x2   :  { %8 = vsyncpa [#allocation3], 0 }
   0x3   :  { %10 = vsyncpa [#allocation3 + $0x1], 0 }
   0x4   :  { %11 = vsyncpa [#allocation6], 0 }
   0x5   :  { %12 = vsyncpa [#allocation4], 0 }
   0x6   :  { %14 = vsyncpa [#allocation4 + $0x1], 0  ;;  %s1228_s12 = smov 0   ;;  %s1230_s13 = smov 0  }
   0x7   :  { %s1232_s14 = smov 0   ;;  %s1234_s15 = smov 0  }
   0x8   :  { %s1236_s16 = smov 0   ;;  %s1238_s17 = smov 0  }
   0x9 LB: > { %s718_s18 = sadd.s32 4294967295, %s1201_s17   ;;  %s719_s19 = sadd.s32 4294967294, %s1201_s17   ;;  %s1201_s17 = sphi %s1238_s17, %s20_s17   ;;  %s1197_s16 = sphi %s1236_s16, %s1478_s16   ;;  %s1193_s15 = sphi %s1234_s15, %s1477_s15   ;;  %s1189_s14 = sphi %s1232_s14, %s1476_s14   ;;  %s1185_s13 = sphi %s1230_s13, %s1475_s13   ;;  %s1181_s12 = sphi %s1228_s12, %s1474_s12  }
   0xa   : > { %p52_p0 = scmp.ne.s32.totalorder %s1185_s13, %s1181_s12  ;;  %p1262_p1 = scmp.eq.s32.totalorder %s718_s18, 0 }
   0xb   : > { %p1266_p2 = scmp.eq.s32.totalorder %s718_s18, 3  ;;  %p136_p3 = scmp.eq.s32.totalorder %s719_s19, 3 }
   0xc   : > { %p1272_p4 = por %p1262_p1, %p52_p0  ;;  %p720_p5 = scmp.ge.s32.totalorder %s1201_s17, 1 }
   0xd   : > { %p1277_p6 = por %p136_p3, %p52_p0  ;;  %p143_p7 = scmp.lt.s32.totalorder %s1201_s17, 5 }
   0xe   : > { %s1469_s1 = sld [smem:[#allocation11_spill]]  ;;  %s1203_s28 = smov [#allocation5]  }
   0xf   : > { %p1285_p8 = pnand %p720_p5, %p143_p7  ;;  %s158_s29 = sshll.u32 %s1203_s28, 4  ;;  %s159_s29 = int_to_ptr.vmem [resolvable:$true] %s158_s29 }
  0x10   : > { %s1463_s30 = smov 64   ;;  %s1205_s4 = smov 4  }
  0x11   : > { %p985_p9 = pneg %p1285_p8  ;;  %s32_s5 = sadd.s32 1, %s1197_s16 }
  0x12   : > { %p34_p11 = scmp.ge.s32.totalorder %s32_s5, 4  ;;  %s39_s6 = sadd.s32 1, %s1189_s14 }
  0x13   : > { %p986_p10 = pnand %p985_p9, %p1262_p1  ;;  %p46_p12 = scmp.ne.s32.totalorder %s1189_s14, %s1185_s13 }
  0x14   : > { %s156_s26 = sshll.u32 %s1469_s1, 4  ;;  %p47_p13 = scmp.eq.s32.totalorder %s1201_s17, 0  ;;  %s157_s26 = int_to_ptr.hbm [resolvable:$true] %s156_s26 }
  0x15   : > { %988 = dma.hbm_to_vmem [thread:$0]  (!%p986_p10), %s157_s26, 1024, %s159_s29, [#allocation6], %s1463_s30, %s1463_s30, %s1205_s4  }
  0x16   : > { %s1480_s5 = smov (%p34_p11, %s32_s5), 0  ;;  %p1303_p0 = por %p47_p13, %p46_p12 }
  0x17   : > { %p1309_p3 = por %p1266_p2, %p46_p12  ;;  %s36_s9 = ssub.s32 %s1197_s16, %s1480_s5 }
  0x18   : > { %p998_p5 = scmp.lt.s32.totalorder %s1201_s17, 4  ;;  %p37_p7 = scmp.eq.s32.totalorder %s36_s9, 0 }
  0x19   : > { %s178_s10 = sand.u32 1, %s1189_s14   ;;  %s832_s19 = sshll.u32 %s1197_s16, 7 }
  0x1a   : > { %s724_s11 = sshll.u32 %s178_s10, 7  ;;  %s187_s26 = scalar_lea.hbm %s1459_s0, %s832_s19 }
  0x1b   : > { %s1318_s18 = scalar_select %p37_p7, %s1189_s14, %s39_s6  }
  0x1c   : > { %s182_s28 = scalar_lea.vmem [#allocation2], %s724_s11  ;;  %s188_s21 = sshll.u32 %s187_s26, 4  ;;  %s189_s21 = int_to_ptr.hbm [resolvable:$true] %s188_s21 }
  0x1d   : > { %s190_s29 = sshll.u32 %s182_s28, 4  ;;  %p990_p2 = pnand %p998_p5, %p1303_p0  ;;  %s191_s29 = int_to_ptr.vmem [resolvable:$true] %s190_s29 }
  0x1e   : > { %s179_s30 = scalar_lea.sflag [#allocation3], %s178_s10  ;;  %s1473_s1 = smov 64  }
  0x1f   : > { %992 = dma.hbm_to_vmem [thread:$0]  (!%p990_p2), %s189_s21, 2048, %s191_s29, %s179_s30, %s1473_s1, %s1473_s1, %s1205_s4  }
  0x20   : > { %202 = sbr.rel (%p1285_p8) target bundleno = 270 (0x10e), region = 32  ;;  %s1332_s6 = sand.u32 (!%p1285_p8), 1, %s1185_s13  }
  0x21   : > { %s728_s9 = sshll.u32 (!%p1285_p8), %s1332_s6, 7  ;;  %s205_s11 = scalar_lea.sflag (!%p1285_p8), [#allocation3], %s1332_s6 }
  0x22   : > { %s1338_s7 = scalar_lea.vmem (!%p1285_p8), [#allocation2], %s728_s9 }
  0x25   : > { %1168 = dma.done.wait (%p1272_p4), %s205_s11, 2048  }
  0x26   : > { %1170 = vsyncadd (%p1272_p4), %s205_s11, 4294965248 }
  0x27   : > { %1172 = dma.done.wait (%p1262_p1), [#allocation6], 1024  }
  0x28   : > { %1174 = vsyncadd (%p1262_p1), [#allocation6], 4294966272  ;;  %v856_v0 = vld [vmem:[#allocation5 + $0x38] sm:$0xff]  ;;  %v855_v1 = vld [vmem:[#allocation5 + $0x30] sm:$0xff]  ;;  %s1375_s22 = scalar_lea.vmem [#allocation7], %s728_s9  ;;  %s857_s27 = sshll.u32 %s1193_s15, 7 }
  0x29   : > { %441 = vmatpush.bf16.msra.mxu0 %v856_v0  ;;  %953 = vmatpush.bf16.msra.mxu1 %v856_v0  ;;  %v854_v2 = vld [vmem:[#allocation5 + $0x28] sm:$0xff]  ;;  %v853_v3 = vld [vmem:[#allocation5 + $0x20] sm:$0xff]  ;;  %v852_v4 = vld [vmem:[#allocation5 + $0x18] sm:$0xff]  ;;  %s607_s10 = scalar_lea.hbm %s1462_s3, %s857_s27  ;;  %s608_s19 = sshll.u32 %s1375_s22, 4  ;;  %s609_s19 = int_to_ptr.vmem [resolvable:$true] %s608_s19 }
  0x2a   : > { %954 = vmatpush.bf16.msra.mxu2 %v856_v0  ;;  %955 = vmatpush.bf16.msra.mxu3 %v856_v0  ;;  %v851_v5 = vld [vmem:[#allocation5 + $0x10] sm:$0xff]  ;;  %v850_v6 = vld [vmem:[#allocation5 + $0x8] sm:$0xff]  ;;  %v849_v7 = vld [vmem:[#allocation5] sm:$0xff]  ;;  %s610_s24 = sshll.u32 %s607_s10, 4  ;;  %s595_s15 = scalar_lea.sflag [#allocation4], %s1332_s6  ;;  %s611_s24 = int_to_ptr.hbm [resolvable:$true] %s610_s24 }
  0x2b   : > { %v833_v8 = vld [vmem:[%s1338_s7] sm:$0xff]  ;;  %v834_v12 = vld [vmem:[%s1338_s7 + $0x8] sm:$0xff]  ;;  %v835_v16 = vld [vmem:[%s1338_s7 + $0x10] sm:$0xff]  ;;  %s1129_s25 = sshra.s32 %s611_s24, 4  ;;  %s1135_s21 = scalar_lea.hbm %s1462_s3, 512  ;;  %s1130_s25 = int_to_ptr.hbm [resolvable:$true] %s1129_s25 }
  0x2c   : > { %v837_v9 = vld [vmem:[%s1338_s7 + $0x20] sm:$0xff]  ;;  %v838_v13 = vld [vmem:[%s1338_s7 + $0x28] sm:$0xff]  ;;  %v839_v17 = vld [vmem:[%s1338_s7 + $0x30] sm:$0xff]  ;;  %s1131_s26 = scalar_lea.hbm %s1130_s25, 128  ;;  %p1136_p9 = scmp.lt.s32.totalorder %s1130_s25, %s1462_s3 }
  0x2d   : > { %442 = vmatpush.bf16.msra.mxu0 %v855_v1  ;;  %956 = vmatpush.bf16.msra.mxu1 %v855_v1  ;;  %v841_v10 = vld [vmem:[%s1338_s7 + $0x40] sm:$0xff]  ;;  %v842_v14 = vld [vmem:[%s1338_s7 + $0x48] sm:$0xff]  ;;  %v843_v18 = vld [vmem:[%s1338_s7 + $0x50] sm:$0xff]  ;;  %p1132_p1 = scmp.ne.s32.totalorder %s1130_s25, %s1131_s26  ;;  %p1137_p10 = scmp.lt.s32.totalorder %s1135_s21, %s1131_s26 }
  0x2e   : > { %957 = vmatpush.bf16.msra.mxu2 %v855_v1  ;;  %958 = vmatpush.bf16.msra.mxu3 %v855_v1  ;;  %v845_v11 = vld [vmem:[%s1338_s7 + $0x60] sm:$0xff]  ;;  %v846_v15 = vld [vmem:[%s1338_s7 + $0x68] sm:$0xff]  ;;  %v847_v19 = vld [vmem:[%s1338_s7 + $0x70] sm:$0xff] }
  0x2f   : > { %v836_v20 = vld [vmem:[%s1338_s7 + $0x18] sm:$0xff]  ;;  %v1367_v26 = vld [vmem:[%s1461_s2] ss:$0 sm:$0xff]  ;;  %p1133_p4 = pnand %p1132_p1, %p1309_p3  ;;  %p1138_p11 = por %p1137_p10, %p1136_p9 }
  0x30   : > { %v840_v21 = vld [vmem:[%s1338_s7 + $0x38] sm:$0xff] }
  0x31   : > { %443 = vmatpush.bf16.msra.mxu0 %v854_v2  ;;  %959 = vmatpush.bf16.msra.mxu1 %v854_v2  ;;  %v844_v22 = vld [vmem:[%s1338_s7 + $0x58] sm:$0xff]  ;;  %p1134_p8 = pneg %p1133_p4 }
  0x32   : > { %960 = vmatpush.bf16.msra.mxu2 %v854_v2  ;;  %961 = vmatpush.bf16.msra.mxu3 %v854_v2  ;;  %v848_v23 = vld [vmem:[%s1338_s7 + $0x78] sm:$0xff] }
  0x33   : > { %p1139_p12 = pnand %p1138_p11, %p1134_p8 }
  0x35   : > { %444 = vmatpush.bf16.msra.mxu0 %v853_v3  ;;  %962 = vmatpush.bf16.msra.mxu1 %v853_v3 }
  0x36   : > { %963 = vmatpush.bf16.msra.mxu2 %v853_v3  ;;  %964 = vmatpush.bf16.msra.mxu3 %v853_v3 }
  0x39   : > { %445 = vmatpush.bf16.msra.mxu0 %v852_v4  ;;  %965 = vmatpush.bf16.msra.mxu1 %v852_v4 }
  0x3a   : > { %966 = vmatpush.bf16.msra.mxu2 %v852_v4  ;;  %967 = vmatpush.bf16.msra.mxu3 %v852_v4 }
  0x3d   : > { %446 = vmatpush.bf16.msra.mxu0 %v851_v5  ;;  %968 = vmatpush.bf16.msra.mxu1 %v851_v5 }
  0x3e   : > { %969 = vmatpush.bf16.msra.mxu2 %v851_v5  ;;  %970 = vmatpush.bf16.msra.mxu3 %v851_v5 }
  0x41   : > { %447 = vmatpush.bf16.msra.mxu0 %v850_v6  ;;  %971 = vmatpush.bf16.msra.mxu1 %v850_v6 }
  0x42   : > { %972 = vmatpush.bf16.msra.mxu2 %v850_v6  ;;  %973 = vmatpush.bf16.msra.mxu3 %v850_v6 }
  0x45   : > { %448 = vmatpush.bf16.msra.mxu0 %v849_v7  ;;  %974 = vmatpush.bf16.msra.mxu1 %v849_v7 }
  0x46   : > { %975 = vmatpush.bf16.msra.mxu2 %v849_v7  ;;  %976 = vmatpush.bf16.msra.mxu3 %v849_v7 }
  0x48   : > { %449 = vmatmul.bf16.vlgmr.msra.gmra.mxu0 %v833_v8  ;;  %469 = vmatmul.bf16.vlgmr.msra.gmra.mxu1 %v837_v9 }
  0x49   : > { %489 = vmatmul.bf16.vlgmr.msra.gmra.mxu2 %v841_v10  ;;  %509 = vmatmul.bf16.vlgmr.msra.gmra.mxu3 %v845_v11 }
  0x58   : > { %454 = vmatmul.bf16.gmra.mxu0 %v834_v12  ;;  %474 = vmatmul.bf16.gmra.mxu1 %v838_v13 }
  0x59   : > { %494 = vmatmul.bf16.gmra.mxu2 %v842_v14  ;;  %514 = vmatmul.bf16.gmra.mxu3 %v846_v15 }
  0x68   : > { %459 = vmatmul.bf16.gmra.mxu0 %v835_v16  ;;  %479 = vmatmul.bf16.gmra.mxu1 %v839_v17 }
  0x69   : > { %499 = vmatmul.bf16.gmra.mxu2 %v843_v18  ;;  %519 = vmatmul.bf16.gmra.mxu3 %v847_v19 }
  0x78   : > { %464 = vmatmul.bf16.gmra.mxu0 %v836_v20  ;;  %484 = vmatmul.bf16.gmra.mxu1 %v840_v21 }
  0x79   : > { %504 = vmatmul.bf16.gmra.mxu2 %v844_v22  ;;  %524 = vmatmul.bf16.gmra.mxu3 %v848_v23 }
  0xc5   : > { %v450_v24 = vpop.f32.mrf.mxu0  ;;  %v470_v25 = vpop.f32.mrf.mxu1 }
  0xc6   : > { %v451_v31 = vadd.f32 %v1367_v26, %v450_v24  ;;  %v471_v32 = vadd.f32 %v1367_v26, %v470_v25 }
  0xcc   : > { %v490_v27 = vpop.f32.mrf.mxu2  ;;  %v510_v28 = vpop.f32.mrf.mxu3 }
  0xcd   : > { %v452_v29 = vpop.f32.mrf.mxu0  ;;  %v472_v30 = vpop.f32.mrf.mxu1  ;;  %v491_v39 = vadd.f32 %v1367_v26, %v490_v27  ;;  %v511_v40 = vadd.f32 %v1367_v26, %v510_v28 }
  0xce   : > { %v453_v33 = vadd.f32 %v1367_v26, %v452_v29  ;;  %v473_v34 = vadd.f32 %v1367_v26, %v472_v30 }
  0xd0   : > { %v861_v35 = vpack.c.bf16 %v453_v33, %v451_v31  ;;  %v881_v36 = vpack.c.bf16 %v473_v34, %v471_v32 }
  0xd2   : > { %862 = vst [vmem:[%s1375_s22] sm:$0xff] %v861_v35  }
  0xd3   : > { %941 = vst [vmem:[%s1375_s22 + $0x20] sm:$0xff] %v881_v36  }
  0xd4   : > { %v492_v37 = vpop.f32.mrf.mxu2  ;;  %v512_v38 = vpop.f32.mrf.mxu3 }
  0xd5   : > { %v493_v41 = vadd.f32 %v1367_v26, %v492_v37  ;;  %v513_v42 = vadd.f32 %v1367_v26, %v512_v38  ;;  %v455_v43 = vpop.f32.mrf.mxu0  ;;  %v475_v44 = vpop.f32.mrf.mxu1 }
  0xd6   : > { %v456_v51 = vadd.f32 %v1367_v26, %v455_v43  ;;  %v476_v52 = vadd.f32 %v1367_v26, %v475_v44 }
  0xd7   : > { %v901_v45 = vpack.c.bf16 %v493_v41, %v491_v39  ;;  %v921_v46 = vpack.c.bf16 %v513_v42, %v511_v40 }
  0xd9   : > { %945 = vst [vmem:[%s1375_s22 + $0x40] sm:$0xff] %v901_v45  }
  0xda   : > { %949 = vst [vmem:[%s1375_s22 + $0x60] sm:$0xff] %v921_v46  }
  0xdc   : > { %v495_v47 = vpop.f32.mrf.mxu2  ;;  %v515_v48 = vpop.f32.mrf.mxu3 }
  0xdd   : > { %v457_v49 = vpop.f32.mrf.mxu0  ;;  %v477_v50 = vpop.f32.mrf.mxu1  ;;  %v496_v59 = vadd.f32 %v1367_v26, %v495_v47  ;;  %v516_v60 = vadd.f32 %v1367_v26, %v515_v48 }
  0xde   : > { %v458_v53 = vadd.f32 %v1367_v26, %v457_v49  ;;  %v478_v54 = vadd.f32 %v1367_v26, %v477_v50 }
  0xe0   : > { %v866_v55 = vpack.c.bf16 %v458_v53, %v456_v51  ;;  %v886_v56 = vpack.c.bf16 %v478_v54, %v476_v52 }
  0xe2   : > { %938 = vst [vmem:[%s1375_s22 + $0x8] sm:$0xff] %v866_v55  }
  0xe3   : > { %942 = vst [vmem:[%s1375_s22 + $0x28] sm:$0xff] %v886_v56  }
  0xe4   : > { %v497_v57 = vpop.f32.mrf.mxu2  ;;  %v517_v58 = vpop.f32.mrf.mxu3 }
  0xe5   : > { %v498_v61 = vadd.f32 %v1367_v26, %v497_v57  ;;  %v518_v62 = vadd.f32 %v1367_v26, %v517_v58  ;;  %v460_v63 = vpop.f32.mrf.mxu0  ;;  %v480_v0 = vpop.f32.mrf.mxu1 }
  0xe6   : > { %v461_v7 = vadd.f32 %v1367_v26, %v460_v63  ;;  %v481_v8 = vadd.f32 %v1367_v26, %v480_v0 }
  0xe7   : > { %v906_v1 = vpack.c.bf16 %v498_v61, %v496_v59  ;;  %v926_v2 = vpack.c.bf16 %v518_v62, %v516_v60 }
  0xe9   : > { %946 = vst [vmem:[%s1375_s22 + $0x48] sm:$0xff] %v906_v1  }
  0xea   : > { %950 = vst [vmem:[%s1375_s22 + $0x68] sm:$0xff] %v926_v2  }
  0xec   : > { %v500_v3 = vpop.f32.mrf.mxu2  ;;  %v520_v4 = vpop.f32.mrf.mxu3 }
  0xed   : > { %v462_v5 = vpop.f32.mrf.mxu0  ;;  %v482_v6 = vpop.f32.mrf.mxu1  ;;  %v501_v15 = vadd.f32 %v1367_v26, %v500_v3  ;;  %v521_v16 = vadd.f32 %v1367_v26, %v520_v4 }
  0xee   : > { %v463_v9 = vadd.f32 %v1367_v26, %v462_v5  ;;  %v483_v10 = vadd.f32 %v1367_v26, %v482_v6 }
  0xf0   : > { %v871_v11 = vpack.c.bf16 %v463_v9, %v461_v7  ;;  %v891_v12 = vpack.c.bf16 %v483_v10, %v481_v8 }
  0xf2   : > { %939 = vst [vmem:[%s1375_s22 + $0x10] sm:$0xff] %v871_v11  }
  0xf3   : > { %943 = vst [vmem:[%s1375_s22 + $0x30] sm:$0xff] %v891_v12  }
  0xf4   : > { %v502_v13 = vpop.f32.mrf.mxu2  ;;  %v522_v14 = vpop.f32.mrf.mxu3 }
  0xf5   : > { %v503_v17 = vadd.f32 %v1367_v26, %v502_v13  ;;  %v523_v18 = vadd.f32 %v1367_v26, %v522_v14  ;;  %v465_v19 = vpop.f32.mrf.mxu0  ;;  %v485_v20 = vpop.f32.mrf.mxu1 }
  0xf6   : > { %v466_v28 = vadd.f32 %v1367_v26, %v465_v19  ;;  %v486_v29 = vadd.f32 %v1367_v26, %v485_v20 }
  0xf7   : > { %v911_v21 = vpack.c.bf16 %v503_v17, %v501_v15  ;;  %v931_v22 = vpack.c.bf16 %v523_v18, %v521_v16 }
  0xf9   : > { %947 = vst [vmem:[%s1375_s22 + $0x50] sm:$0xff] %v911_v21  }
  0xfa   : > { %951 = vst [vmem:[%s1375_s22 + $0x70] sm:$0xff] %v931_v22  }
  0xfc   : > { %v505_v23 = vpop.f32.mrf.mxu2  ;;  %v525_v24 = vpop.f32.mrf.mxu3 }
  0xfd   : > { %v467_v25 = vpop.f32.mrf.mxu0  ;;  %v487_v27 = vpop.f32.mrf.mxu1  ;;  %v506_v36 = vadd.f32 %v1367_v26, %v505_v23  ;;  %v526_v37 = vadd.f32 %v1367_v26, %v525_v24 }
  0xfe   : > { %v468_v30 = vadd.f32 %v1367_v26, %v467_v25  ;;  %v488_v31 = vadd.f32 %v1367_v26, %v487_v27 }
 0x100   : > { %v876_v32 = vpack.c.bf16 %v468_v30, %v466_v28  ;;  %v896_v33 = vpack.c.bf16 %v488_v31, %v486_v29 }
 0x102   : > { %940 = vst [vmem:[%s1375_s22 + $0x18] sm:$0xff] %v876_v32  }
 0x103   : > { %944 = vst [vmem:[%s1375_s22 + $0x38] sm:$0xff] %v896_v33  }
 0x104   : > { %v507_v34 = vpop.f32.mrf.mxu2  ;;  %v527_v35 = vpop.f32.mrf.mxu3 }
 0x105   : > { %v508_v38 = vadd.f32 %v1367_v26, %v507_v34  ;;  %v528_v39 = vadd.f32 %v1367_v26, %v527_v35 }
 0x107   : > { %v916_v40 = vpack.c.bf16 %v508_v38, %v506_v36  ;;  %v936_v41 = vpack.c.bf16 %v528_v39, %v526_v37 }
 0x109   : > { %948 = vst [vmem:[%s1375_s22 + $0x58] sm:$0xff] %v916_v40  }
 0x10a   : > { %952 = vst [vmem:[%s1375_s22 + $0x78] sm:$0xff] %v936_v41  }
 0x10b   : > { %1142 = shalt.err (!%p1139_p12)
}
 0x10c   : > { %s1206_s6 = smov 64   ;;  %s1207_s7 = smov 4  }
 0x10d   : > { %983 = dma.vmem_to_hbm [thread:$0]  (%p1309_p3), %s609_s19, 2048, %s611_s24, %s595_s15, %s1206_s6, %s1206_s6, %s1207_s7  }
 0x10e PF: > { %p1000_p13 = scmp.ge.s32.totalorder %s1201_s17, 2  ;;  %s625_s1 = sand.u32 1, %s1181_s12  }
 0x10f   : > { %s626_s20 = scalar_lea.sflag [#allocation4], %s625_s1 }
 0x110   : > { %p994_p0 = pnand %p1000_p13, %p1277_p6 }
 0x112   : > { %p995_p5 = pneg %p994_p0 }
 0x114   : > { %1176 = dma.done.wait (%p995_p5), %s626_s20, 2048  }
 0x115   : > { %1178 = vsyncadd (%p995_p5), %s626_s20, 4294965248  ;;  %s20_s17 = sadd.s32 1, %s1201_s17   ;;  %s1474_s12 = smov %s1185_s13 }
 0x116   : > { %p17_p7 = scmp.ge.s32.totalorder %s20_s17, 6   ;;  %s1475_s13 = smov %s1189_s14 }
 0x117   : > { %s1476_s14 = smov %s1318_s18  ;;  %s1477_s15 = smov %s1197_s16 }
 0x118   : > { %s1478_s16 = smov %s1480_s5  ;;  %19 = sbr.rel (!%p17_p7) target bundleno = 9 (0x9), region = 85 }
 0x11d   :  { %632 = vsyncpa [#allocation3], 1 }
 0x11e   :  { %634 = vsyncpa [#allocation3 + $0x1], 1 }
 0x11f   :  { %635 = vsyncpa [#allocation6], 1 }
 0x120   :  { %636 = vsyncpa [#allocation4], 1 }
 0x121   :  { %638 = vsyncpa [#allocation4 + $0x1], 1 }

</bundles_post_ra>
